<compile_context>
chip_gen: v7x
topology: tpu7x:2x2x1
jax: 0.10.0
libtpu: 0.0.40
codegen_flags: <defaults>
</compile_context>

<pallas_src>
import math

import jax
import jax.numpy as jnp
from jax import lax
from jax.experimental import pallas as pl
from jax.experimental.pallas import tpu as pltpu  # noqa: F401  (kept for TPU-targeted builds)

B = 2            # batch
D_MODEL = 32     # feature dim (C)
HEADS = 4        # num heads
DIM = D_MODEL // HEADS   # per-head dim (= 8)
N = 16           # num points in x
M = 16           # num points in source


# ---------------------------------------------------------------------------
# Single fused kernel: QKV projection + attention (all batches & heads) + merge
# ---------------------------------------------------------------------------
def _fused_mha_kernel(inp_ref, mask_ref, wqkv_ref, bqkv_ref, wout_ref, bout_ref, o_ref):
    """inp_ref  : (C, B*N + B*M) f32  -- [x | source], channel-major, batch folded into lanes
       mask_ref : (B*N, B*M)     f32  -- 1.0 where query and key belong to the same batch
       wqkv_ref : (3C, C), bqkv_ref: (3C, 1) -- stacked, head-block-permuted projections
       wout_ref : (C, C),  bout_ref: (C, 1)  -- merge conv (columns head-block-permuted)
       o_ref    : (C, B*N)       f32  -- lane-dense output slab
    """
    bn, bm = mask_ref.shape
    c = wout_ref.shape[0]
    d = c // HEADS
    scale = 1.0 / math.sqrt(d)

    # One MXU push projects Q (from the x columns) and K/V (from the source columns)
    # for every batch and head at once.
    qkv = jnp.dot(wqkv_ref[...], inp_ref[...],
                  preferred_element_type=jnp.float32) + bqkv_ref[...]
    q = qkv[0 * c:1 * c, :bn]     # (C, B*N)
    k = qkv[1 * c:2 * c, bn:]     # (C, B*M)
    v = qkv[2 * c:3 * c, bn:]     # (C, B*M)

    same_batch = mask_ref[...] > 0.5

    heads_out = []
    for h in range(HEADS):                      # static unroll (HEADS = 4)
        q_h = q[h * d:(h + 1) * d, :]           # (D, B*N)  aligned 8-sublane block
        k_h = k[h * d:(h + 1) * d, :]           # (D, B*M)
        v_h = v[h * d:(h + 1) * d, :]           # (D, B*M)

        # Scores for all batches at once; k is consumed un-transposed (no k.T).
        s = jnp.dot(q_h.T, k_h, preferred_element_type=jnp.float32) * scale  # (B*N, B*M)
        s = jnp.where(same_batch, s, -1e30)     # block-diagonal batch mask
        s = s - jnp.max(s, axis=-1, keepdims=True)
        e = jnp.exp(s)
        p = e * pl.reciprocal(jnp.sum(e, axis=-1, keepdims=True), approx=True)

        # o_h[d, bn] = sum_bm v_h[d, bm] * p[bn, bm]   (trans_b dot_general, no p.T)
        o_h = lax.dot_general(v_h, p, (((1,), (1,)), ((), ())),
                              preferred_element_type=jnp.float32)            # (D, B*N)
        heads_out.append(o_h)

    merged = jnp.concatenate(heads_out, axis=0)            # (C, B*N), rows (head, dim)
    out = jnp.dot(wout_ref[...], merged,
                  preferred_element_type=jnp.float32) + bout_ref[...]
    o_ref[...] = out.astype(o_ref.dtype)


# ---------------------------------------------------------------------------
# One-time host-side parameter repacking (model-load time, not per step)
# ---------------------------------------------------------------------------
def _permute_head_rows(w, b):
    """Reorder output channels from torch's (dim, head)-interleaved order (c = d*H + h)
       to (head, dim)-blocked order so each head is a contiguous 8-row block."""
    c = w.shape[0]
    w_p = w.reshape(DIM, HEADS, -1).transpose(1, 0, 2).reshape(c, -1)
    b_p = b.reshape(DIM, HEADS, 1).transpose(1, 0, 2).reshape(c, 1)
    return w_p, b_p


def fuse_params(params):
    wq, bq = _permute_head_rows(params["wq"], params["bq"])
    wk, bk = _permute_head_rows(params["wk"], params["bk"])
    wv, bv = _permute_head_rows(params["wv"], params["bv"])
    wqkv = jnp.concatenate([wq, wk, wv], axis=0)      # (3C, C)
    bqkv = jnp.concatenate([bq, bk, bv], axis=0)      # (3C, 1)
    # The merge conv consumes the (head, dim)-blocked layout -> permute its input columns.
    wm = params["wm"]
    c = wm.shape[0]
    wout = wm.reshape(c, DIM, HEADS).transpose(0, 2, 1).reshape(c, c)
    return {"wqkv": wqkv, "bqkv": bqkv, "wout": wout, "bout": params["bm"]}


# ---------------------------------------------------------------------------
# Forward (k=None branch of MultiHeadedAttention.forward)
# ---------------------------------------------------------------------------
def multi_headed_attention_forward(x, source, fused):
    # TODO(synk): dynamic_attention (k != None branch: topk + sparse scatter softmax) not implemented.
    bb, c, n = x.shape
    m = source.shape[2]

    # Layout plumbing only (tiny, fused by XLA under jit): fold batch into lanes.
    x_flat = jnp.transpose(x, (1, 0, 2)).reshape(c, bb * n)
    s_flat = jnp.transpose(source, (1, 0, 2)).reshape(c, bb * m)
    inp = jnp.concatenate([x_flat, s_flat], axis=1)                    # (C, B*(N+M))
    mask = (jnp.arange(bb * n)[:, None] // n ==
            jnp.arange(bb * m)[None, :] // m).astype(jnp.float32)      # (B*N, B*M)

    out_slab = pl.pallas_call(
        _fused_mha_kernel,
        out_shape=jax.ShapeDtypeStruct((c, bb * n), jnp.float32),
    )(inp, mask, fused["wqkv"], fused["bqkv"], fused["wout"], fused["bout"])

    # Lane-dense (C, B*N) slab -> (B, C, N)
    return out_slab.reshape(c, bb, n).transpose(1, 0, 2)


# ---------------------------------------------------------------------------
# Pure-JAX reference (mirrors the PyTorch math exactly, raw parameters)
# ---------------------------------------------------------------------------
def reference_forward(x, source, params):
    def conv(t, w, b):
        return jnp.einsum("oc,bcl->bol", w, t) + b.reshape(1, -1, 1)

    Bb, C, n = x.shape
    m = source.shape[2]
    q = conv(x, params["wq"], params["bq"]).reshape(Bb, DIM, HEADS, n)
    k = conv(source, params["wk"], params["bk"]).reshape(Bb, DIM, HEADS, m)
    v = conv(source, params["wv"], params["bv"]).reshape(Bb, DIM, HEADS, m)
    scores = jnp.einsum("bdhn,bdhm->bhnm", q, k) / (DIM ** 0.5)
    prob = jax.nn.softmax(scores, axis=-1)
    o = jnp.einsum("bhnm,bdhm->bdhn", prob, v).reshape(Bb, C, n)
    return conv(o, params["wm"], params["bm"])


def make_params(key):
    """Deterministic synthetic parameters.  Conv1d(d_model, d_model, 1):
       weight (d_model, d_model) [kernel dim of size 1 squeezed], bias (d_model, 1)."""
    keys = jax.random.split(key, 8)
    scale = 1.0 / math.sqrt(D_MODEL)
    params = {}
    for i, name in enumerate(("q", "k", "v", "m")):
        params[f"w{name}"] = (
            jax.random.normal(keys[2 * i], (D_MODEL, D_MODEL), jnp.float32) * scale)
        params[f"b{name}"] = (
            jax.random.normal(keys[2 * i + 1], (D_MODEL, 1), jnp.float32) * scale)
    return params


if __name__ == "__main__":
    root = jax.random.PRNGKey(0)
    kx, ks, kp = jax.random.split(root, 3)

    x = jax.random.normal(kx, (B, D_MODEL, N), jnp.float32)        # (batch, d_model, n)
    source = jax.random.normal(ks, (B, D_MODEL, M), jnp.float32)   # (batch, d_model, m)
    params = make_params(kp)
    fused = fuse_params(params)    # one-time weight repack (stacked QKV + head-block permute)

    fwd = jax.jit(multi_headed_attention_forward)
    out = jax.block_until_ready(fwd(x, source, fused))

    ref = reference_forward(x, source, params)
    assert out.shape == (B, D_MODEL, N), out.shape
    # The EUP approximate reciprocal in the softmax denominator contributes ~1e-3-level
    # relative error vs the exact reference, hence the slightly looser tolerance.
    assert jnp.allclose(out, ref, atol=5e-3, rtol=5e-3), (
        float(jnp.max(jnp.abs(out - ref))))

    print("KERNEL_OK")
</pallas_src>

<mosaic_0001>
module attributes {stable_mosaic.version = 11 : i64} {
  func.func @_fused_mha_kernel(%arg0: memref<32x64xf32, #tpu.memory_space<vmem>>, %arg1: memref<32x32xf32, #tpu.memory_space<vmem>>, %arg2: memref<96x32xf32, #tpu.memory_space<vmem>>, %arg3: memref<96x1xf32, #tpu.memory_space<vmem>>, %arg4: memref<32x32xf32, #tpu.memory_space<vmem>>, %arg5: memref<32x1xf32, #tpu.memory_space<vmem>>, %arg6: memref<32x32xf32, #tpu.memory_space<vmem>>) attributes {dimension_semantics = [], scalar_prefetch = 0 : i64, scratch_operands = 0 : i64, tpu.core_type = #tpu.core_type<tc>} {
    %c0 = arith.constant 0 : index
    %c0_0 = arith.constant 0 : index
    %0 = vector.load %arg2[%c0, %c0_0] : memref<96x32xf32, #tpu.memory_space<vmem>>, vector<96x32xf32>
    %c0_1 = arith.constant 0 : index
    %c0_2 = arith.constant 0 : index
    %1 = vector.load %arg0[%c0_1, %c0_2] : memref<32x64xf32, #tpu.memory_space<vmem>>, vector<32x64xf32>
    %cst = arith.constant dense<0.000000e+00> : vector<96x64xf32>
    %2 = tpu.matmul %0, %1, %cst {dimension_numbers = #tpu.dot_dimension_numbers<[1], [0], [0], [1], [0, 0, 1, 1], [], []>} : vector<96x32xf32>, vector<32x64xf32>, vector<96x64xf32> -> vector<96x64xf32>
    %c0_3 = arith.constant 0 : index
    %c0_4 = arith.constant 0 : index
    %3 = vector.load %arg3[%c0_3, %c0_4] : memref<96x1xf32, #tpu.memory_space<vmem>>, vector<96x1xf32>
    %4 = vector.broadcast %3 : vector<96x1xf32> to vector<96x64xf32>
    %5 = arith.addf %2, %4 : vector<96x64xf32>
    %6 = vector.extract_strided_slice %5 {offsets = [0, 0], sizes = [32, 32], strides = [1, 1]} : vector<96x64xf32> to vector<32x32xf32>
    %7 = vector.extract_strided_slice %5 {offsets = [32, 32], sizes = [32, 32], strides = [1, 1]} : vector<96x64xf32> to vector<32x32xf32>
    %8 = vector.extract_strided_slice %5 {offsets = [64, 32], sizes = [32, 32], strides = [1, 1]} : vector<96x64xf32> to vector<32x32xf32>
    %c0_5 = arith.constant 0 : index
    %c0_6 = arith.constant 0 : index
    %9 = vector.load %arg1[%c0_5, %c0_6] : memref<32x32xf32, #tpu.memory_space<vmem>>, vector<32x32xf32>
    %cst_7 = arith.constant 5.000000e-01 : f32
    %10 = vector.broadcast %cst_7 : f32 to vector<32x32xf32>
    %11 = arith.cmpf ogt, %9, %10 : vector<32x32xf32>
    %12 = vector.extract_strided_slice %6 {offsets = [0, 0], sizes = [8, 32], strides = [1, 1]} : vector<32x32xf32> to vector<8x32xf32>
    %13 = vector.extract_strided_slice %7 {offsets = [0, 0], sizes = [8, 32], strides = [1, 1]} : vector<32x32xf32> to vector<8x32xf32>
    %14 = vector.extract_strided_slice %8 {offsets = [0, 0], sizes = [8, 32], strides = [1, 1]} : vector<32x32xf32> to vector<8x32xf32>
    %15 = tpu.transpose %12, [1, 0] : vector<8x32xf32> -> vector<32x8xf32>
    %cst_8 = arith.constant dense<0.000000e+00> : vector<32x32xf32>
    %16 = tpu.matmul %15, %13, %cst_8 {dimension_numbers = #tpu.dot_dimension_numbers<[1], [0], [0], [1], [0, 0, 1, 1], [], []>} : vector<32x8xf32>, vector<8x32xf32>, vector<32x32xf32> -> vector<32x32xf32>
    %cst_9 = arith.constant 0.353553385 : f32
    %17 = vector.broadcast %cst_9 : f32 to vector<32x32xf32>
    %18 = arith.mulf %16, %17 : vector<32x32xf32>
    %cst_10 = arith.constant -1.000000e+30 : f32
    %19 = vector.broadcast %cst_10 : f32 to vector<32x32xf32>
    %20 = arith.select %11, %18, %19 : vector<32x32xi1>, vector<32x32xf32>
    %cst_11 = arith.constant dense<0xFF800000> : vector<32xf32>
    %21 = vector.multi_reduction <maximumf>, %20, %cst_11 [1] : vector<32x32xf32> to vector<32xf32>
    %22 = vector.shape_cast %21 : vector<32xf32> to vector<32x1xf32>
    %23 = vector.broadcast %22 : vector<32x1xf32> to vector<32x32xf32>
    %24 = arith.subf %20, %23 : vector<32x32xf32>
    %25 = math.exp %24 : vector<32x32xf32>
    %cst_12 = arith.constant dense<0.000000e+00> : vector<32xf32>
    %26 = vector.multi_reduction <add>, %25, %cst_12 [1] : vector<32x32xf32> to vector<32xf32>
    %27 = vector.shape_cast %26 : vector<32xf32> to vector<32x1xf32>
    %28 = tpu.reciprocal %27 {approx = true} : vector<32x1xf32> -> vector<32x1xf32>
    %29 = vector.broadcast %28 : vector<32x1xf32> to vector<32x32xf32>
    %30 = arith.mulf %25, %29 : vector<32x32xf32>
    %cst_13 = arith.constant dense<0.000000e+00> : vector<8x32xf32>
    %31 = tpu.matmul %14, %30, %cst_13 {dimension_numbers = #tpu.dot_dimension_numbers<[1], [1], [0], [0], [0, 0, 1, 0], [], []>} : vector<8x32xf32>, vector<32x32xf32>, vector<8x32xf32> -> vector<8x32xf32>
    %32 = vector.extract_strided_slice %6 {offsets = [8, 0], sizes = [8, 32], strides = [1, 1]} : vector<32x32xf32> to vector<8x32xf32>
    %33 = vector.extract_strided_slice %7 {offsets = [8, 0], sizes = [8, 32], strides = [1, 1]} : vector<32x32xf32> to vector<8x32xf32>
    %34 = vector.extract_strided_slice %8 {offsets = [8, 0], sizes = [8, 32], strides = [1, 1]} : vector<32x32xf32> to vector<8x32xf32>
    %35 = tpu.transpose %32, [1, 0] : vector<8x32xf32> -> vector<32x8xf32>
    %cst_14 = arith.constant dense<0.000000e+00> : vector<32x32xf32>
    %36 = tpu.matmul %35, %33, %cst_14 {dimension_numbers = #tpu.dot_dimension_numbers<[1], [0], [0], [1], [0, 0, 1, 1], [], []>} : vector<32x8xf32>, vector<8x32xf32>, vector<32x32xf32> -> vector<32x32xf32>
    %cst_15 = arith.constant 0.353553385 : f32
    %37 = vector.broadcast %cst_15 : f32 to vector<32x32xf32>
    %38 = arith.mulf %36, %37 : vector<32x32xf32>
    %cst_16 = arith.constant -1.000000e+30 : f32
    %39 = vector.broadcast %cst_16 : f32 to vector<32x32xf32>
    %40 = arith.select %11, %38, %39 : vector<32x32xi1>, vector<32x32xf32>
    %cst_17 = arith.constant dense<0xFF800000> : vector<32xf32>
    %41 = vector.multi_reduction <maximumf>, %40, %cst_17 [1] : vector<32x32xf32> to vector<32xf32>
    %42 = vector.shape_cast %41 : vector<32xf32> to vector<32x1xf32>
    %43 = vector.broadcast %42 : vector<32x1xf32> to vector<32x32xf32>
    %44 = arith.subf %40, %43 : vector<32x32xf32>
    %45 = math.exp %44 : vector<32x32xf32>
    %cst_18 = arith.constant dense<0.000000e+00> : vector<32xf32>
    %46 = vector.multi_reduction <add>, %45, %cst_18 [1] : vector<32x32xf32> to vector<32xf32>
    %47 = vector.shape_cast %46 : vector<32xf32> to vector<32x1xf32>
    %48 = tpu.reciprocal %47 {approx = true} : vector<32x1xf32> -> vector<32x1xf32>
    %49 = vector.broadcast %48 : vector<32x1xf32> to vector<32x32xf32>
    %50 = arith.mulf %45, %49 : vector<32x32xf32>
    %cst_19 = arith.constant dense<0.000000e+00> : vector<8x32xf32>
    %51 = tpu.matmul %34, %50, %cst_19 {dimension_numbers = #tpu.dot_dimension_numbers<[1], [1], [0], [0], [0, 0, 1, 0], [], []>} : vector<8x32xf32>, vector<32x32xf32>, vector<8x32xf32> -> vector<8x32xf32>
    %52 = vector.extract_strided_slice %6 {offsets = [16, 0], sizes = [8, 32], strides = [1, 1]} : vector<32x32xf32> to vector<8x32xf32>
    %53 = vector.extract_strided_slice %7 {offsets = [16, 0], sizes = [8, 32], strides = [1, 1]} : vector<32x32xf32> to vector<8x32xf32>
    %54 = vector.extract_strided_slice %8 {offsets = [16, 0], sizes = [8, 32], strides = [1, 1]} : vector<32x32xf32> to vector<8x32xf32>
    %55 = tpu.transpose %52, [1, 0] : vector<8x32xf32> -> vector<32x8xf32>
    %cst_20 = arith.constant dense<0.000000e+00> : vector<32x32xf32>
    %56 = tpu.matmul %55, %53, %cst_20 {dimension_numbers = #tpu.dot_dimension_numbers<[1], [0], [0], [1], [0, 0, 1, 1], [], []>} : vector<32x8xf32>, vector<8x32xf32>, vector<32x32xf32> -> vector<32x32xf32>
    %cst_21 = arith.constant 0.353553385 : f32
    %57 = vector.broadcast %cst_21 : f32 to vector<32x32xf32>
    %58 = arith.mulf %56, %57 : vector<32x32xf32>
    %cst_22 = arith.constant -1.000000e+30 : f32
    %59 = vector.broadcast %cst_22 : f32 to vector<32x32xf32>
    %60 = arith.select %11, %58, %59 : vector<32x32xi1>, vector<32x32xf32>
    %cst_23 = arith.constant dense<0xFF800000> : vector<32xf32>
    %61 = vector.multi_reduction <maximumf>, %60, %cst_23 [1] : vector<32x32xf32> to vector<32xf32>
    %62 = vector.shape_cast %61 : vector<32xf32> to vector<32x1xf32>
    %63 = vector.broadcast %62 : vector<32x1xf32> to vector<32x32xf32>
    %64 = arith.subf %60, %63 : vector<32x32xf32>
    %65 = math.exp %64 : vector<32x32xf32>
    %cst_24 = arith.constant dense<0.000000e+00> : vector<32xf32>
    %66 = vector.multi_reduction <add>, %65, %cst_24 [1] : vector<32x32xf32> to vector<32xf32>
    %67 = vector.shape_cast %66 : vector<32xf32> to vector<32x1xf32>
    %68 = tpu.reciprocal %67 {approx = true} : vector<32x1xf32> -> vector<32x1xf32>
    %69 = vector.broadcast %68 : vector<32x1xf32> to vector<32x32xf32>
    %70 = arith.mulf %65, %69 : vector<32x32xf32>
    %cst_25 = arith.constant dense<0.000000e+00> : vector<8x32xf32>
    %71 = tpu.matmul %54, %70, %cst_25 {dimension_numbers = #tpu.dot_dimension_numbers<[1], [1], [0], [0], [0, 0, 1, 0], [], []>} : vector<8x32xf32>, vector<32x32xf32>, vector<8x32xf32> -> vector<8x32xf32>
    %72 = vector.extract_strided_slice %6 {offsets = [24, 0], sizes = [8, 32], strides = [1, 1]} : vector<32x32xf32> to vector<8x32xf32>
    %73 = vector.extract_strided_slice %7 {offsets = [24, 0], sizes = [8, 32], strides = [1, 1]} : vector<32x32xf32> to vector<8x32xf32>
    %74 = vector.extract_strided_slice %8 {offsets = [24, 0], sizes = [8, 32], strides = [1, 1]} : vector<32x32xf32> to vector<8x32xf32>
    %75 = tpu.transpose %72, [1, 0] : vector<8x32xf32> -> vector<32x8xf32>
    %cst_26 = arith.constant dense<0.000000e+00> : vector<32x32xf32>
    %76 = tpu.matmul %75, %73, %cst_26 {dimension_numbers = #tpu.dot_dimension_numbers<[1], [0], [0], [1], [0, 0, 1, 1], [], []>} : vector<32x8xf32>, vector<8x32xf32>, vector<32x32xf32> -> vector<32x32xf32>
    %cst_27 = arith.constant 0.353553385 : f32
    %77 = vector.broadcast %cst_27 : f32 to vector<32x32xf32>
    %78 = arith.mulf %76, %77 : vector<32x32xf32>
    %cst_28 = arith.constant -1.000000e+30 : f32
    %79 = vector.broadcast %cst_28 : f32 to vector<32x32xf32>
    %80 = arith.select %11, %78, %79 : vector<32x32xi1>, vector<32x32xf32>
    %cst_29 = arith.constant dense<0xFF800000> : vector<32xf32>
    %81 = vector.multi_reduction <maximumf>, %80, %cst_29 [1] : vector<32x32xf32> to vector<32xf32>
    %82 = vector.shape_cast %81 : vector<32xf32> to vector<32x1xf32>
    %83 = vector.broadcast %82 : vector<32x1xf32> to vector<32x32xf32>
    %84 = arith.subf %80, %83 : vector<32x32xf32>
    %85 = math.exp %84 : vector<32x32xf32>
    %cst_30 = arith.constant dense<0.000000e+00> : vector<32xf32>
    %86 = vector.multi_reduction <add>, %85, %cst_30 [1] : vector<32x32xf32> to vector<32xf32>
    %87 = vector.shape_cast %86 : vector<32xf32> to vector<32x1xf32>
    %88 = tpu.reciprocal %87 {approx = true} : vector<32x1xf32> -> vector<32x1xf32>
    %89 = vector.broadcast %88 : vector<32x1xf32> to vector<32x32xf32>
    %90 = arith.mulf %85, %89 : vector<32x32xf32>
    %cst_31 = arith.constant dense<0.000000e+00> : vector<8x32xf32>
    %91 = tpu.matmul %74, %90, %cst_31 {dimension_numbers = #tpu.dot_dimension_numbers<[1], [1], [0], [0], [0, 0, 1, 0], [], []>} : vector<8x32xf32>, vector<32x32xf32>, vector<8x32xf32> -> vector<8x32xf32>
    %92 = tpu.concatenate %31, %51, %71, %91 in 0 : vector<8x32xf32>, vector<8x32xf32>, vector<8x32xf32>, vector<8x32xf32> -> vector<32x32xf32>
    %c0_32 = arith.constant 0 : index
    %c0_33 = arith.constant 0 : index
    %93 = vector.load %arg4[%c0_32, %c0_33] : memref<32x32xf32, #tpu.memory_space<vmem>>, vector<32x32xf32>
    %cst_34 = arith.constant dense<0.000000e+00> : vector<32x32xf32>
    %94 = tpu.matmul %93, %92, %cst_34 {dimension_numbers = #tpu.dot_dimension_numbers<[1], [0], [0], [1], [0, 0, 1, 1], [], []>} : vector<32x32xf32>, vector<32x32xf32>, vector<32x32xf32> -> vector<32x32xf32>
    %c0_35 = arith.constant 0 : index
    %c0_36 = arith.constant 0 : index
    %95 = vector.load %arg5[%c0_35, %c0_36] : memref<32x1xf32, #tpu.memory_space<vmem>>, vector<32x1xf32>
    %96 = vector.broadcast %95 : vector<32x1xf32> to vector<32x32xf32>
    %97 = arith.addf %94, %96 : vector<32x32xf32>
    %c0_37 = arith.constant 0 : index
    %c0_38 = arith.constant 0 : index
    %98 = vector.load %arg6[%c0_37, %c0_38] : memref<32x32xf32, #tpu.memory_space<vmem>>, vector<32x32xf32>
    tpu.vector_store %arg6[%c0_37, %c0_38], %97 {strides = array<i32>} : memref<32x32xf32, #tpu.memory_space<vmem>>, vector<32x32xf32>,
    return
  }
}

</mosaic_0001>

<bundles_post_ra>
// kernel: multi_headed_attention_forward.1
= control target key start
LH: loop header
LB: loop body
LE: loop exit
PB: predicated region body
PF: predicated region fallthrough
CT: control target
= control target key end

     0   :  { %vm111_vm0 = vcmask 261120   ;;  %v1854_v3 = vmov 0   ;;  %s1855_s20 = smov 96   ;;  %vm317_vm1 = vcmask 64512   ;;  %vm1857_vm6 = vmmov 0   ;;  %s2230_s0 = inlined_call_operand.vmem [shape: f32[32,64], index: 0, kind: input, shape index: {}]   ;;  %s2231_s2 = inlined_call_operand.vmem [shape: f32[96,32], index: 2, kind: input, shape index: {}]   ;;  %s2232_s3 = inlined_call_operand.vmem [shape: f32[96,1], index: 3, kind: input, shape index: {}]   ;;  %s2233_s1 = inlined_call_operand.vmem [shape: f32[32,32], index: 1, kind: input, shape index: {}]   ;;  %s2234_s5 = inlined_call_operand.vmem [shape: f32[32,1], index: 5, kind: input, shape index: {}]   ;;  %s2235_s4 = inlined_call_operand.vmem [shape: f32[32,32], index: 4, kind: input, shape index: {}]   ;;  %s2236_s6 = inlined_call_operand.vmem [shape: f32[32,32], index: 6, kind: output, shape index: {}]  }
   0x1   :  { %v35_v0 = vld [vmem:[%s2230_s0] sm:$0xff]  ;;  %v36_v1 = vld [vmem:[%s2230_s0 + $0x8] sm:$0xff]  ;;  %v37_v2 = vld [vmem:[%s2230_s0 + $0x10] sm:$0xff]  ;;  %1788 = vset.pattern.permute.xlu0 %v1854_v3 }
   0x2   :  { %v1735_v4 = vpack.c.bf16 %v36_v1, %v35_v0  ;;  %v38_v5 = vld [vmem:[%s2230_s0 + $0x18] sm:$0xff]  ;;  %v23_v6 = vld [vmem:[%s2231_s2] sm:$0xff]  ;;  %v24_v10 = vld [vmem:[%s2231_s2 + $0x8] sm:$0xff] }
   0x3   :  { %v1739_v7 = vpack.c.bf16 %v38_v5, %v37_v2  ;;  %1627 = vmatprep.mubr.msk.f32.mxu0 %vm111_vm0, %v23_v6  ;;  %v43_v8 = vld [vmem:[%s2232_s3 + $0x20] sm:$0xff]  ;;  %v25_v11 = vld [vmem:[%s2231_s2 + $0x10] sm:$0xff]  ;;  %v26_v12 = vld [vmem:[%s2231_s2 + $0x18] sm:$0xff] }
   0x4   :  { %1736 = vmatprep.subr.bf16.mxu0 %v1735_v4  ;;  %73 = vperm.xlu0 %1788, %v43_v8   ;;  %v39_v9 = vld [vmem:[%s2232_s3] sm:$0xff]  ;;  %v28_v14 = vld [vmem:[%s2231_s2 + $0x28] sm:$0xff]  ;;  %v29_v25 = vld [vmem:[%s2231_s2 + $0x30] sm:$0xff] }
   0x5   :  { %1738 = vmatpush3.bf16.msra.mxu0 %v1735_v4  ;;  %v27_v13 = vld [vmem:[%s2231_s2 + $0x20] sm:$0xff]  ;;  %v30_v26 = vld [vmem:[%s2231_s2 + $0x38] sm:$0xff]  ;;  %v32_v28 = vld [vmem:[%s2231_s2 + $0x48] sm:$0xff] }
   0x6   :  { %1740 = vmatprep.subr.bf16.mxu0 %v1739_v7  ;;  %v31_v27 = vld [vmem:[%s2231_s2 + $0x40] sm:$0xff]  ;;  %v1973_v36 = vld [vmem:[%s2233_s1 + $0x8] sm:$0xff]  ;;  %v1983_v42 = vld [vmem:[%s2233_s1 + $0x18] sm:$0xff] }
   0x7   :  { %v1968_v34 = vld [vmem:[%s2233_s1] sm:$0xff]  ;;  %vm278_vm3 = vcmp.gt.f32.partialorder %v1973_v36, 0.5  ;;  %v1990_v44 = vld [vmem:[%s2233_s1 + $0x10] sm:$0xff]  ;;  %vm280_vm4 = vcmp.gt.f32.partialorder %v1983_v42, 0.5  ;;  %v40_v54 = vld [vmem:[%s2232_s3 + $0x8] sm:$0xff] }
   0x8   :  { %53 = vperm.xlu0 %1788, %v39_v9   ;;  %vm277_vm2 = vcmp.gt.f32.partialorder %v1968_v34, 0.5  ;;  %vm279_vm5 = vcmp.gt.f32.partialorder %v1990_v44, 0.5  ;;  %v47_v56 = vld [vmem:[%s2232_s3 + $0x40] sm:$0xff]  ;;  %v44_v60 = vld [vmem:[%s2232_s3 + $0x28] sm:$0xff]  ;;  %vm2036_vm7 = vmpackc.low %vm111_vm0, %vm111_vm0 }
   0x9   :  { %1742 = vmatpush3.bf16.msra.mxu0 %v1739_v7  ;;  %v49_v42 = vld [vmem:[%s2232_s3 + $0x50] sm:$0xff] }
   0xc   :  { %1628 = vmatmul.mubr.msk.f32.vlgmr.msra.gmra.mrb[0].mxu0 %vm111_vm0, %v24_v10 }
   0xd   :  { %1630 = vmatprep.mubr.msk.f32.mxu0 %vm111_vm0, %v25_v11 }
  0x10   :  { %1631 = vmatmul.mubr.msk.f32.gmra.mrb[2].mxu0 %vm111_vm0, %v26_v12 }
  0x11   :  { %1633 = vmatprep.mubr.msk.f32.mxu0 %vm111_vm0, %v27_v13 }
  0x14   :  { %1634 = vmatmul.mubr.msk.f32.gmra.mrb[4].mxu0 %vm111_vm0, %v28_v14 }
  0x15   :  { %1636 = vmatprep.mubr.msk.f32.mxu0 %vm111_vm0, %v29_v25  ;;  %v1856_v25 = vmov 0.0|0.0  }
  0x16   :  { %1751 = vmatprep.subr.bf16.mxu0 %v1856_v25 }
  0x18   :  { %1637 = vmatmul.mubr.msk.f32.gmra.mrb[6].mxu0 %vm111_vm0, %v30_v26  ;;  %v48_v26 = vld [vmem:[%s2232_s3 + $0x48] sm:$0xff] }
  0x19   :  { %1639 = vmatprep.mubr.msk.f32.mxu0 %vm111_vm0, %v31_v27  ;;  %v45_v27 = vld [vmem:[%s2232_s3 + $0x30] sm:$0xff] }
  0x1c   :  { %1640 = vmatmul.mubr.msk.f32.gmra.mrb[8].mxu0 %vm111_vm0, %v32_v28 }
  0x83   :  { %v74_v20 = vpop.permute.xlu0 %73 }
  0x87   :  { %v54_v23 = vpop.permute.xlu0 %53 }
  0xdf   :  { %v1936_v15 = vpop.f32.mrb[0].mxu0 }
  0xe0   :  { %v214_v16 = vpop.f32.mrb[1].mxu0 }
  0xe1   :  { %v215_v24 = vadd.f32 %v214_v16, %v54_v23 }
  0xe3   :  { %v1938_v17 = vpop.f32.mrb[2].mxu0 }
  0xe4   :  { %v1940_v18 = vpop.f32.mrb[3].mxu0 }
  0xe7   :  { %v1942_v19 = vpop.f32.mrb[4].mxu0 }
  0xe8   :  { %v234_v21 = vpop.f32.mrb[5].mxu0 }
  0xe9   :  { %v235_v22 = vadd.f32 %v234_v21, %v74_v20 }
  0xeb   :  { %314 = vrot.lane.b32.xlu1 %v235_v22, %s1855_s20  ;;  %v2004_v55 = vpop.f32.mrb[6].mxu0 }
  0xec   :  { %v2009_v57 = vpop.f32.mrb[7].mxu0 }
  0xef   :  { %v2011_v58 = vpop.f32.mrb[8].mxu0 }
  0xf0   :  { %v254_v59 = vpop.f32.mrb[9].mxu0 }
 0x114   :  { %281 = vxpose.xlu1.b32.start.end [1/1] (short) (narrow) %v215_v24, 32 }
 0x132   :  { %1789 = vset.pattern.permute.xlu1 %v1854_v3 }
 0x15d   :  { %v315_v29 = vpop.permute.xlu1 %314 }
 0x15e   :  { %1645 = vmatprep.subr.mxu1 %v315_v29 }
 0x15f   :  { %1646 = vmatpush3.msra.mxu1 %v315_v29 }
 0x160   :  { %1743 = vmatprep.subr.bf16.mxu1 %v1856_v25 }
 0x194   :  { %v297_v30 = vpop.trf.xlu1 }
 0x195   :  { %1647 = vmatprep.mubr.msk.f32.mxu1 %vm317_vm1, %v297_v30 }
 0x198   :  { %v298_v31 = vpop.trf.xlu1 }
 0x199   :  { %1648 = vmatmul.mubr.msk.f32.vlgmr.msra.gmra.mrb[0].mxu1 %vm317_vm1, %v298_v31 }
 0x19c   :  { %v299_v32 = vpop.trf.xlu1 }
 0x19d   :  { %1650 = vmatprep.mubr.msk.f32.mxu1 %vm317_vm1, %v299_v32 }
 0x1a0   :  { %v300_v33 = vpop.trf.xlu1 }
 0x1a1   :  { %1651 = vmatmul.mubr.msk.f32.gmra.mrb[2].mxu1 %vm317_vm1, %v300_v33 }
 0x26c   :  { %v1649_v35 = vpop.f32.mrb[0].mxu1 }
 0x26d   :  { %v396_v37 = vpop.f32.mrb[1].mxu1  ;;  %v416_v38 = vmul.f32 0.35355338, %v1649_v35 }
 0x26e   :  { %v415_v39 = vmul.f32 0.35355338, %v396_v37 }
 0x26f   :  { %v420_v43 = vsel %vm278_vm3, %v416_v38, -1e+30 }
 0x270   :  { %v419_v40 = vsel %vm277_vm2, %v415_v39, -1e+30  ;;  %v426_v48 = vsel %vm111_vm0, %v420_v43, -inf }
 0x271   :  { %v423_v41 = vsel %vm111_vm0, %v419_v40, -inf }
 0x272   :  { %424 = vmax.xlane.f32.xlu0 %v423_v41 }
 0x274   :  { %v1652_v45 = vpop.f32.mrb[2].mxu1 }
 0x275   :  { %v418_v46 = vmul.f32 0.35355338, %v1652_v45  ;;  %v406_v47 = vpop.f32.mrb[3].mxu1 }
 0x276   :  { %v417_v49 = vmul.f32 0.35355338, %v406_v47  ;;  %427 = vmax.xlane.f32.xlu0 %v426_v48 }
 0x277   :  { %v422_v50 = vsel %vm280_vm4, %v418_v46, -1e+30 }
 0x278   :  { %v432_v51 = vsel %vm111_vm0, %v422_v50, -inf  ;;  %v421_v52 = vsel %vm279_vm5, %v417_v49, -1e+30 }
 0x279   :  { %433 = vmax.xlane.f32.xlu1 %v432_v51  ;;  %v429_v53 = vsel %vm111_vm0, %v421_v52, -inf }
 0x27a   :  { %430 = vmax.xlane.f32.xlu0 %v429_v53 }
 0x28a   :  { %58 = vperm.xlu1 %1789, %v40_v54  }
 0x290   :  { %93 = vperm.xlu0 %1788, %v47_v56  }
 0x294   :  { %78 = vperm.xlu0 %1788, %v44_v60  }
 0x2ff   :  { %v425_v61 = vpop.xlane.xlu0 %424 }
 0x300   :  { %v435_v62 = vsub.f32 %v419_v40, %v425_v61 }
 0x302   :  { %v439_v63 = vmul.f32 1.442695, %v435_v62 }
 0x303   :  { %v428_v0 = vpop.xlane.xlu0 %427 }
 0x304   :  { %1790 = vpow2.f32 %v439_v63  ;;  %v436_v1 = vsub.f32 %v420_v43, %v428_v0 }
 0x306   :  { %v441_v2 = vmul.f32 1.442695, %v436_v1  ;;  %v434_v3 = vpop.xlane.xlu1 %433 }
 0x307   :  { %v438_v4 = vsub.f32 %v422_v50, %v434_v3  ;;  %v431_v5 = vpop.xlane.xlu0 %430 }
 0x308   :  { %1792 = vpow2.f32 %v441_v2  ;;  %v437_v6 = vsub.f32 %v421_v52, %v431_v5 }
 0x309   :  { %v445_v7 = vmul.f32 1.442695, %v438_v4 }
 0x30a   :  { %v443_v8 = vmul.f32 1.442695, %v437_v6  ;;  %v59_v28 = vpop.permute.xlu1 %58 }
 0x30b   :  { %v220_v29 = vadd.f32 %v1936_v15, %v59_v28 }
 0x30c   :  { %1794 = vpow2.f32 %v443_v8 }
 0x30d   :  { %1796 = vpow2.f32 %v445_v7 }
 0x30e   :  { %v1791_v9 = vpop.eup %1790 }
 0x30f   :  { %v447_v10 = vsel %vm111_vm0, %v1791_v9, 0.0  ;;  %v94_v20 = vpop.permute.xlu0 %93 }
 0x310   :  { %448 = vadd.xlane.f32.xlu0 %v447_v10  ;;  %v255_v24 = vadd.f32 %v254_v59, %v94_v20 }
 0x312   :  { %v1793_v11 = vpop.eup %1792 }
 0x313   :  { %v450_v12 = vsel %vm111_vm0, %v1793_v11, 0.0  ;;  %v79_v22 = vpop.permute.xlu0 %78 }
 0x314   :  { %451 = vadd.xlane.f32.xlu1 %v450_v12  ;;  %v240_v23 = vadd.f32 %v1942_v19, %v79_v22  ;;  %v1858_v19 = vmov 0.0   ;;  %v46_v12 = vld [vmem:[%s2232_s3 + $0x38] sm:$0xff] }
 0x315   :  { %1661 = vmatprep.mubr.msk.f32.mxu1 %vm1857_vm6, %v1858_v19 }
 0x316   :  { %v1795_v13 = vpop.eup %1794 }
 0x317   :  { %v453_v14 = vsel %vm111_vm0, %v1795_v13, 0.0  ;;  %v1797_v16 = vpop.eup %1796 }
 0x318   :  { %454 = vadd.xlane.f32.xlu0 %v453_v14  ;;  %v456_v21 = vsel %vm111_vm0, %v1797_v16, 0.0 }
 0x31c   :  { %457 = vadd.xlane.f32.xlu0 %v456_v21 }
 0x325   :  { %587 = vrot.lane.b32.xlu1 %v240_v23, %s1855_s20 }
 0x332   :  { %468 = vrot.lane.b32.xlu0 %v255_v24, %s1855_s20 }
 0x336   :  { %98 = vperm.xlu0 %1788, %v48_v26  }
 0x33a   :  { %83 = vperm.xlu0 %1788, %v45_v27  }
 0x34e   :  { %554 = vxpose.xlu1.b32.start.end [1/1] (short) (narrow) %v220_v29, 32 }
 0x39d   :  { %v449_v30 = vpop.xlane.xlu0 %448 }
 0x39e   :  { %1798 = vrcp.f32 %v449_v30 }
 0x3a1   :  { %v452_v31 = vpop.xlane.xlu1 %451 }
 0x3a2   :  { %1800 = vrcp.f32 %v452_v31  ;;  %v42_v31 = vld [vmem:[%s2232_s3 + $0x18] sm:$0xff] }
 0x3a5   :  { %v455_v32 = vpop.xlane.xlu0 %454  ;;  %v588_v48 = vpop.permute.xlu1 %587 }
 0x3a6   :  { %1802 = vrcp.f32 %v455_v32 }
 0x3a8   :  { %v1799_v35 = vpop.eup %1798 }
 0x3a9   :  { %v458_v33 = vpop.xlane.xlu0 %457  ;;  %v463_v38 = vmul.f32 %v1799_v35, %v1791_v9 }
 0x3aa   :  { %1804 = vrcp.f32 %v458_v33 }
 0x3ac   :  { %v1801_v37 = vpop.eup %1800 }
 0x3ad   :  { %v464_v39 = vmul.f32 %v1801_v37, %v1793_v11  ;;  %v469_v49 = vpop.permute.xlu0 %468  ;;  %v41_v11 = vld [vmem:[%s2232_s3 + $0x10] sm:$0xff] }
 0x3af   :  { %v1744_v15 = vpack.c.bf16 %v464_v39, %v463_v38 }
 0x3b0   :  { %v1803_v41 = vpop.eup %1802 }
 0x3b1   :  { %1746 = vmatpush3.bf16.xpose.msk.msra.mxu1 %vm2036_vm7, %v1744_v15  ;;  %v465_v45 = vmul.f32 %v1803_v41, %v1795_v13 }
 0x3b2   :  { %1747 = vmatprep.subr.bf16.mxu1 %v1856_v25 }
 0x3b4   :  { %v1805_v43 = vpop.eup %1804 }
 0x3b5   :  { %v466_v46 = vmul.f32 %v1805_v43, %v1797_v16  ;;  %v99_v13 = vpop.permute.xlu0 %98 }
 0x3b6   :  { %v260_v30 = vadd.f32 %v2011_v58, %v99_v13 }
 0x3b7   :  { %v1748_v47 = vpack.c.bf16 %v466_v46, %v465_v45 }
 0x3b9   :  { %1750 = vmatpush3.bf16.xpose.msk.msra.mxu1 %vm2036_vm7, %v1748_v47  ;;  %v84_v14 = vpop.permute.xlu0 %83 }
 0x3ba   :  { %1664 = vmatprep.subr.mxu1 %v588_v48  ;;  %v245_v47 = vadd.f32 %v2009_v57, %v84_v14 }
 0x3c0   :  { %1662 = vmatmul.mubr.msk.f32.vlgmr.msra.gmra.mrb[4].mxu1 %vm111_vm0, %v469_v49  ;;  %v34_v49 = vld [vmem:[%s2231_s2 + $0x58] sm:$0xff] }
 0x3c1   :  { %1665 = vmatpush3.msra.mxu1 %v588_v48  ;;  %v33_v48 = vld [vmem:[%s2231_s2 + $0x50] sm:$0xff] }
 0x3c2   :  { %1642 = vmatprep.mubr.msk.f32.mxu0 %vm111_vm0, %v33_v48 }
 0x3c3   :  { %1643 = vmatmul.mubr.msk.f32.gmra.mrb[10].mxu0 %vm111_vm0, %v34_v49 }
 0x3c4   :  { %1680 = vmatprep.mubr.msk.f32.mxu0 %vm1857_vm6, %v1858_v19 }
 0x3ce   :  { %v570_v50 = vpop.trf.xlu1 }
 0x3cf   :  { %1666 = vmatprep.mubr.msk.f32.mxu1 %vm317_vm1, %v570_v50 }
 0x3d2   :  { %v571_v51 = vpop.trf.xlu1 }
 0x3d3   :  { %1667 = vmatmul.mubr.msk.f32.vlgmr.msra.gmra.mrb[6].mxu1 %vm317_vm1, %v571_v51 }
 0x3d6   :  { %v572_v52 = vpop.trf.xlu1 }
 0x3d7   :  { %1669 = vmatprep.mubr.msk.f32.mxu1 %vm317_vm1, %v572_v52 }
 0x3da   :  { %v573_v53 = vpop.trf.xlu1 }
 0x3db   :  { %1670 = vmatmul.mubr.msk.f32.gmra.mrb[8].mxu1 %vm317_vm1, %v573_v53 }
 0x493   :  { %v2050_v54 = vpop.f32.mrb[4].mxu1 }
 0x494   :  { %v1663_v56 = vpop.f32.mrb[5].mxu1 }
 0x4a6   :  { %v1668_v59 = vpop.f32.mrb[6].mxu1 }
 0x4a7   :  { %v688_v60 = vmul.f32 0.35355338, %v1668_v59  ;;  %v668_v61 = vpop.f32.mrb[7].mxu1 }
 0x4a8   :  { %v687_v62 = vmul.f32 0.35355338, %v668_v61 }
 0x4a9   :  { %v692_v63 = vsel %vm278_vm3, %v688_v60, -1e+30 }
 0x4aa   :  { %v698_v0 = vsel %vm111_vm0, %v692_v63, -inf  ;;  %v691_v1 = vsel %vm277_vm2, %v687_v62, -1e+30 }
 0x4ab   :  { %699 = vmax.xlane.f32.xlu1 %v698_v0  ;;  %v695_v2 = vsel %vm111_vm0, %v691_v1, -inf }
 0x4ac   :  { %696 = vmax.xlane.f32.xlu0 %v695_v2 }
 0x4ae   :  { %v1671_v3 = vpop.f32.mrb[8].mxu1 }
 0x4af   :  { %v690_v4 = vmul.f32 0.35355338, %v1671_v3  ;;  %v678_v5 = vpop.f32.mrb[9].mxu1 }
 0x4b0   :  { %v689_v6 = vmul.f32 0.35355338, %v678_v5 }
 0x4b1   :  { %v694_v7 = vsel %vm280_vm4, %v690_v4, -1e+30 }
 0x4b2   :  { %v704_v8 = vsel %vm111_vm0, %v694_v7, -inf  ;;  %v693_v9 = vsel %vm279_vm5, %v689_v6, -1e+30 }
 0x4b3   :  { %705 = vmax.xlane.f32.xlu0 %v704_v8  ;;  %v701_v10 = vsel %vm111_vm0, %v693_v9, -inf }
 0x4b7   :  { %702 = vmax.xlane.f32.xlu0 %v701_v10 }
 0x4bc   :  { %63 = vperm.xlu1 %1789, %v41_v11  }
 0x4cd   :  { %88 = vperm.xlu0 %1788, %v46_v12  }
 0x538   :  { %v700_v16 = vpop.xlane.xlu1 %699 }
 0x539   :  { %v708_v20 = vsub.f32 %v692_v63, %v700_v16  ;;  %v697_v21 = vpop.xlane.xlu0 %696  ;;  %v2115_v16 = vpop.f32.mrb[10].mxu0 }
 0x53a   :  { %v707_v22 = vsub.f32 %v691_v1, %v697_v21 }
 0x53b   :  { %v713_v23 = vmul.f32 1.442695, %v708_v20  ;;  %v2117_v20 = vpop.f32.mrb[11].mxu0 }
 0x53c   :  { %v711_v24 = vmul.f32 1.442695, %v707_v22 }
 0x53d   :  { %1806 = vpow2.f32 %v713_v23 }
 0x53e   :  { %1808 = vpow2.f32 %v711_v24 }
 0x540   :  { %v706_v32 = vpop.xlane.xlu0 %705 }
 0x541   :  { %v710_v37 = vsub.f32 %v694_v7, %v706_v32 }
 0x543   :  { %v717_v39 = vmul.f32 1.442695, %v710_v37 }
 0x544   :  { %v703_v33 = vpop.xlane.xlu0 %702 }
 0x545   :  { %v709_v35 = vsub.f32 %v693_v9, %v703_v33 }
 0x547   :  { %v1807_v26 = vpop.eup %1806  ;;  %v715_v38 = vmul.f32 1.442695, %v709_v35 }
 0x548   :  { %v1809_v27 = vpop.eup %1808  ;;  %v722_v28 = vsel %vm111_vm0, %v1807_v26, 0.0 }
 0x549   :  { %723 = vadd.xlane.f32.xlu1 %v722_v28  ;;  %v719_v29 = vsel %vm111_vm0, %v1809_v27, 0.0  ;;  %1810 = vpow2.f32 %v715_v38 }
 0x54a   :  { %720 = vadd.xlane.f32.xlu0 %v719_v29  ;;  %1812 = vpow2.f32 %v717_v39 }
 0x54c   :  { %v89_v45 = vpop.permute.xlu0 %88 }
 0x54d   :  { %v250_v46 = vadd.f32 %v2004_v55, %v89_v45  ;;  %v64_v55 = vpop.permute.xlu1 %63 }
 0x54e   :  { %v225_v57 = vadd.f32 %v1940_v18, %v64_v55 }
 0x553   :  { %v1811_v15 = vpop.eup %1810 }
 0x554   :  { %v1813_v41 = vpop.eup %1812  ;;  %v725_v43 = vsel %vm111_vm0, %v1811_v15, 0.0 }
 0x555   :  { %v728_v58 = vsel %vm111_vm0, %v1813_v41, 0.0 }
 0x55a   :  { %740 = vrot.lane.b32.xlu1 %v260_v30, %s1855_s20 }
 0x560   :  { %68 = vperm.xlu0 %1788, %v42_v31  }
 0x57e   :  { %726 = vadd.xlane.f32.xlu1 %v725_v43 }
 0x57f   :  { %729 = vadd.xlane.f32.xlu0 %v728_v58 }
 0x58f   :  { %1131 = vrot.lane.b32.xlu1 %v250_v46, %s1855_s20 }
 0x595   :  { %859 = vrot.lane.b32.xlu0 %v245_v47, %s1855_s20 }
 0x5b8   :  { %826 = vxpose.xlu1.b32.start.end [1/1] (short) (narrow) %v225_v57, 32 }
 0x5d6   :  { %v724_v50 = vpop.xlane.xlu1 %723 }
 0x5d7   :  { %1814 = vrcp.f32 %v724_v50  ;;  %v721_v51 = vpop.xlane.xlu0 %720 }
 0x5d8   :  { %1816 = vrcp.f32 %v721_v51 }
 0x5da   :  { %v741_v18 = vpop.permute.xlu1 %740 }
 0x5df   :  { %v69_v52 = vpop.permute.xlu0 %68 }
 0x5e0   :  { %v230_v53 = vadd.f32 %v1938_v17, %v69_v52 }
 0x5e1   :  { %v1815_v56 = vpop.eup %1814 }
 0x5e2   :  { %v1817_v59 = vpop.eup %1816  ;;  %v736_v60 = vmul.f32 %v1815_v56, %v1807_v26  ;;  %1098 = vxpose.xlu0.b32.start.end [1/1] (short) (narrow) %v230_v53, 32  ;;  %v50_v56 = vld [vmem:[%s2232_s3 + $0x58] sm:$0xff] }
 0x5e3   :  { %v735_v61 = vmul.f32 %v1817_v59, %v1809_v27 }
 0x5e5   :  { %v1752_v62 = vpack.c.bf16 %v736_v60, %v735_v61 }
 0x5e7   :  { %1754 = vmatpush3.bf16.xpose.msk.msra.mxu0 %vm2036_vm7, %v1752_v62 }
 0x5e8   :  { %1755 = vmatprep.subr.bf16.mxu0 %v1856_v25 }
 0x60b   :  { %v727_v63 = vpop.xlane.xlu1 %726 }
 0x60c   :  { %1818 = vrcp.f32 %v727_v63  ;;  %v730_v0 = vpop.xlane.xlu0 %729 }
 0x60d   :  { %1820 = vrcp.f32 %v730_v0 }
 0x60f   :  { %v1132_v6 = vpop.permute.xlu1 %1131 }
 0x610   :  { %v860_v1 = vpop.permute.xlu0 %859 }
 0x611   :  { %1683 = vmatprep.subr.mxu1 %v860_v1 }
 0x612   :  { %1684 = vmatpush3.msra.mxu1 %v860_v1 }
 0x613   :  { %1759 = vmatprep.subr.bf16.mxu1 %v1856_v25 }
 0x616   :  { %v1819_v17 = vpop.eup %1818 }
 0x617   :  { %v1821_v2 = vpop.eup %1820  ;;  %v737_v3 = vmul.f32 %v1819_v17, %v1811_v15 }
 0x618   :  { %v738_v4 = vmul.f32 %v1821_v2, %v1813_v41 }
 0x61a   :  { %v1756_v5 = vpack.c.bf16 %v738_v4, %v737_v3 }
 0x61c   :  { %1758 = vmatpush3.bf16.xpose.msk.msra.mxu0 %vm2036_vm7, %v1756_v5 }
 0x61d   :  { %1702 = vmatprep.subr.mxu0 %v1132_v6 }
 0x623   :  { %1681 = vmatmul.mubr.msk.f32.vlgmr.msra.gmra.mrb[12].mxu0 %vm111_vm0, %v741_v18 }
 0x624   :  { %1703 = vmatpush3.msra.mxu0 %v1132_v6 }
 0x625   :  { %1767 = vmatprep.subr.bf16.mxu0 %v1856_v25 }
 0x638   :  { %v842_v7 = vpop.trf.xlu1 }
 0x639   :  { %1685 = vmatprep.mubr.msk.f32.mxu1 %vm317_vm1, %v842_v7 }
 0x63c   :  { %v843_v8 = vpop.trf.xlu1 }
 0x63d   :  { %1686 = vmatmul.mubr.msk.f32.vlgmr.msra.gmra.mrb[10].mxu1 %vm317_vm1, %v843_v8 }
 0x640   :  { %v844_v9 = vpop.trf.xlu1 }
 0x641   :  { %1688 = vmatprep.mubr.msk.f32.mxu1 %vm317_vm1, %v844_v9 }
 0x644   :  { %v845_v10 = vpop.trf.xlu1 }
 0x645   :  { %1689 = vmatmul.mubr.msk.f32.gmra.mrb[12].mxu1 %vm317_vm1, %v845_v10 }
 0x646   :  { %1699 = vmatprep.mubr.msk.f32.mxu1 %vm1857_vm6, %v1858_v19 }
 0x662   :  { %v1114_v11 = vpop.trf.xlu0 }
 0x663   :  { %1704 = vmatprep.mubr.msk.f32.mxu0 %vm317_vm1, %v1114_v11 }
 0x666   :  { %v1115_v12 = vpop.trf.xlu0 }
 0x667   :  { %1705 = vmatmul.mubr.msk.f32.vlgmr.msra.gmra.mrb[14].mxu0 %vm317_vm1, %v1115_v12 }
 0x66a   :  { %v1116_v13 = vpop.trf.xlu0 }
 0x66b   :  { %1707 = vmatprep.mubr.msk.f32.mxu0 %vm317_vm1, %v1116_v13 }
 0x66e   :  { %v1117_v14 = vpop.trf.xlu0 }
 0x66f   :  { %1708 = vmatmul.mubr.msk.f32.gmra.mrb[16].mxu0 %vm317_vm1, %v1117_v14 }
 0x670   :  { %1718 = vmatprep.mubr.msk.f32.mxu0 %vm1857_vm6, %v1858_v19 }
 0x6f6   :  { %v822_v21 = vpop.f32.mrb[12].mxu0 }
 0x6f7   :  { %v2120_v22 = vpack.c.bf16 %v822_v21, %v2050_v54  ;;  %v1682_v23 = vpop.f32.mrb[13].mxu0 }
 0x710   :  { %v1687_v24 = vpop.f32.mrb[10].mxu1 }
 0x711   :  { %v960_v26 = vmul.f32 0.35355338, %v1687_v24  ;;  %v940_v27 = vpop.f32.mrb[11].mxu1 }
 0x712   :  { %v959_v28 = vmul.f32 0.35355338, %v940_v27 }
 0x713   :  { %v964_v29 = vsel %vm278_vm3, %v960_v26, -1e+30 }
 0x714   :  { %v970_v30 = vsel %vm111_vm0, %v964_v29, -inf  ;;  %v963_v19 = vsel %vm277_vm2, %v959_v28, -1e+30 }
 0x715   :  { %971 = vmax.xlane.f32.xlu0 %v970_v30  ;;  %v967_v31 = vsel %vm111_vm0, %v963_v19, -inf }
 0x716   :  { %968 = vmax.xlane.f32.xlu1 %v967_v31 }
 0x718   :  { %v1690_v32 = vpop.f32.mrb[12].mxu1 }
 0x719   :  { %v950_v54 = vpop.f32.mrb[13].mxu1  ;;  %v962_v45 = vmul.f32 0.35355338, %v1690_v32 }
 0x71a   :  { %v961_v33 = vmul.f32 0.35355338, %v950_v54 }
 0x71b   :  { %v966_v57 = vsel %vm280_vm4, %v962_v45, -1e+30 }
 0x71c   :  { %v965_v35 = vsel %vm279_vm5, %v961_v33, -1e+30  ;;  %v976_v51 = vsel %vm111_vm0, %v966_v57, -inf }
 0x71d   :  { %v973_v37 = vsel %vm111_vm0, %v965_v35, -inf }
 0x71e   :  { %974 = vmax.xlane.f32.xlu1 %v973_v37 }
 0x73a   :  { %v1706_v38 = vpop.f32.mrb[14].mxu0 }
 0x73b   :  { %v1232_v39 = vmul.f32 0.35355338, %v1706_v38  ;;  %v1212_v15 = vpop.f32.mrb[15].mxu0 }
 0x73c   :  { %v1231_v41 = vmul.f32 0.35355338, %v1212_v15 }
 0x73d   :  { %v1236_v43 = vsel %vm278_vm3, %v1232_v39, -1e+30 }
 0x73e   :  { %v1242_v58 = vsel %vm111_vm0, %v1236_v43, -inf  ;;  %v1235_v46 = vsel %vm277_vm2, %v1231_v41, -1e+30 }
 0x73f   :  { %1243 = vmax.xlane.f32.xlu1 %v1242_v58  ;;  %v1239_v48 = vsel %vm111_vm0, %v1235_v46, -inf  ;;  %v1374_v58 = vld [vmem:[%s2234_s5] sm:$0xff] }
 0x742   :  { %v1709_v47 = vpop.f32.mrb[16].mxu0 }
 0x743   :  { %v1234_v49 = vmul.f32 0.35355338, %v1709_v47  ;;  %1240 = vmax.xlane.f32.xlu1 %v1239_v48  ;;  %v1222_v55 = vpop.f32.mrb[17].mxu0  ;;  %v1377_v47 = vld [vmem:[%s2234_s5 + $0x18] sm:$0xff] }
 0x744   :  { %v1233_v50 = vmul.f32 0.35355338, %v1222_v55 }
 0x745   :  { %v1238_v36 = vsel %vm280_vm4, %v1234_v49, -1e+30 }
 0x746   :  { %v1237_v52 = vsel %vm279_vm5, %v1233_v50, -1e+30  ;;  %v1248_v53 = vsel %vm111_vm0, %v1238_v36, -inf }
 0x747   :  { %977 = vmax.xlane.f32.xlu1 %v976_v51  ;;  %v1245_v34 = vsel %vm111_vm0, %v1237_v52, -inf }
 0x748   :  { %1246 = vmax.xlane.f32.xlu0 %v1245_v34 }
 0x74b   :  { %1249 = vmax.xlane.f32.xlu1 %v1248_v53 }
 0x75c   :  { %108 = vperm.xlu1 %1789, %v50_v56  }
 0x75e   :  { %103 = vperm.xlu0 %1788, %v49_v42  }
 0x7a2   :  { %v972_v59 = vpop.xlane.xlu0 %971 }
 0x7a3   :  { %v980_v44 = vsub.f32 %v964_v29, %v972_v59  ;;  %v969_v60 = vpop.xlane.xlu1 %968 }
 0x7a4   :  { %v979_v61 = vsub.f32 %v963_v19, %v969_v60 }
 0x7a5   :  { %v985_v62 = vmul.f32 1.442695, %v980_v44 }
 0x7a6   :  { %v983_v18 = vmul.f32 1.442695, %v979_v61 }
 0x7a7   :  { %1822 = vpow2.f32 %v985_v62 }
 0x7a8   :  { %1824 = vpow2.f32 %v983_v18 }
 0x7ab   :  { %v975_v2 = vpop.xlane.xlu1 %974 }
 0x7ac   :  { %v981_v5 = vsub.f32 %v965_v35, %v975_v2 }
 0x7ae   :  { %v987_v9 = vmul.f32 1.442695, %v981_v5 }
 0x7b1   :  { %v2152_v63 = vpop.eup %1822 }
 0x7b2   :  { %v2154_v0 = vpop.eup %1824  ;;  %v994_v1 = vsel %vm111_vm0, %v2152_v63, 0.0 }
 0x7b3   :  { %995 = vadd.xlane.f32.xlu0 %v994_v1  ;;  %v991_v17 = vsel %vm111_vm0, %v2154_v0, 0.0 }
 0x7b4   :  { %992 = vadd.xlane.f32.xlu1 %v991_v17 }
 0x7cc   :  { %v1244_v3 = vpop.xlane.xlu1 %1243 }
 0x7cd   :  { %v1252_v4 = vsub.f32 %v1236_v43, %v1244_v3 }
 0x7cf   :  { %v1257_v6 = vmul.f32 1.442695, %v1252_v4 }
 0x7d0   :  { %v1241_v7 = vpop.xlane.xlu1 %1240 }
 0x7d1   :  { %1826 = vpow2.f32 %v1257_v6  ;;  %v1251_v8 = vsub.f32 %v1235_v46, %v1241_v7  ;;  %v1376_v46 = vld [vmem:[%s2234_s5 + $0x10] sm:$0xff] }
 0x7d3   :  { %v1255_v10 = vmul.f32 1.442695, %v1251_v8  ;;  %v1370_v8 = vld [vmem:[%s2235_s4] sm:$0xff] }
 0x7d4   :  { %v978_v11 = vpop.xlane.xlu1 %977 }
 0x7d5   :  { %1828 = vpow2.f32 %v1255_v10  ;;  %v982_v12 = vsub.f32 %v966_v57, %v978_v11  ;;  %v1247_v13 = vpop.xlane.xlu0 %1246 }
 0x7d6   :  { %v1253_v14 = vsub.f32 %v1237_v52, %v1247_v13  ;;  %1830 = vpow2.f32 %v987_v9  ;;  %v1372_v13 = vld [vmem:[%s2235_s4 + $0x10] sm:$0xff] }
 0x7d7   :  { %v989_v21 = vmul.f32 1.442695, %v982_v12 }
 0x7d8   :  { %v1259_v23 = vmul.f32 1.442695, %v1253_v14  ;;  %v1250_v24 = vpop.xlane.xlu1 %1249  ;;  %v1373_v14 = vld [vmem:[%s2235_s4 + $0x18] sm:$0xff] }
 0x7d9   :  { %1832 = vpow2.f32 %v989_v21  ;;  %v1254_v26 = vsub.f32 %v1238_v36, %v1250_v24 }
 0x7da   :  { %1834 = vpow2.f32 %v1259_v23 }
 0x7db   :  { %v1827_v27 = vpop.eup %1826  ;;  %v1261_v28 = vmul.f32 1.442695, %v1254_v26 }
 0x7dc   :  { %v1266_v29 = vsel %vm111_vm0, %v1827_v27, 0.0  ;;  %v109_v15 = vpop.permute.xlu1 %108 }
 0x7dd   :  { %1836 = vpow2.f32 %v1261_v28  ;;  %1267 = vadd.xlane.f32.xlu1 %v1266_v29  ;;  %v270_v41 = vadd.f32 %v2115_v16, %v109_v15  ;;  %v104_v43 = vpop.permute.xlu0 %103  ;;  %v1375_v16 = vld [vmem:[%s2234_s5 + $0x8] sm:$0xff] }
 0x7de   :  { %v265_v45 = vadd.f32 %v2117_v20, %v104_v43 }
 0x7df   :  { %v1829_v30 = vpop.eup %1828 }
 0x7e0   :  { %v1263_v19 = vsel %vm111_vm0, %v1829_v30, 0.0  ;;  %v1831_v31 = vpop.eup %1830 }
 0x7e1   :  { %1264 = vadd.xlane.f32.xlu0 %v1263_v19  ;;  %v997_v33 = vsel %vm111_vm0, %v1831_v31, 0.0 }
 0x7e3   :  { %v1833_v32 = vpop.eup %1832 }
 0x7e4   :  { %v1000_v54 = vsel %vm111_vm0, %v1833_v32, 0.0  ;;  %v1835_v35 = vpop.eup %1834 }
 0x7e5   :  { %1001 = vadd.xlane.f32.xlu1 %v1000_v54  ;;  %998 = vadd.xlane.f32.xlu0 %v997_v33  ;;  %v1269_v39 = vsel %vm111_vm0, %v1835_v35, 0.0 }
 0x7e7   :  { %v1837_v37 = vpop.eup %1836 }
 0x7e8   :  { %v1272_v38 = vsel %vm111_vm0, %v1837_v37, 0.0 }
 0x7e9   :  { %1273 = vadd.xlane.f32.xlu1 %v1272_v38  ;;  %1270 = vadd.xlane.f32.xlu0 %v1269_v39 }
 0x7fa   :  { %1284 = vrot.lane.b32.xlu1 %v270_v41, %s1855_s20 }
 0x7fe   :  { %1380 = vperm.xlu1 %1789, %v1374_v58  }
 0x7ff   :  { %1012 = vrot.lane.b32.xlu0 %v265_v45, %s1855_s20 }
 0x802   :  { %1390 = vperm.xlu1 %1789, %v1376_v46  }
 0x803   :  { %1385 = vperm.xlu0 %1788, %v1375_v16  }
 0x807   :  { %1395 = vperm.xlu0 %1788, %v1377_v47  }
 0x840   :  { %v996_v48 = vpop.xlane.xlu0 %995 }
 0x841   :  { %1838 = vrcp.f32 %v996_v48  ;;  %v993_v20 = vpop.xlane.xlu1 %992 }
 0x842   :  { %1840 = vrcp.f32 %v993_v20 }
 0x84b   :  { %v1839_v49 = vpop.eup %1838 }
 0x84c   :  { %v1841_v55 = vpop.eup %1840  ;;  %v1008_v57 = vmul.f32 %v1839_v49, %v2152_v63 }
 0x84d   :  { %v1007_v50 = vmul.f32 %v1841_v55, %v2154_v0 }
 0x84f   :  { %v1760_v36 = vpack.c.bf16 %v1008_v57, %v1007_v50 }
 0x851   :  { %1762 = vmatpush3.bf16.xpose.msk.msra.mxu1 %vm2036_vm7, %v1760_v36 }
 0x852   :  { %1763 = vmatprep.subr.bf16.mxu1 %v1856_v25 }
 0x86a   :  { %v1268_v51 = vpop.xlane.xlu1 %1267 }
 0x86b   :  { %1842 = vrcp.f32 %v1268_v51 }
 0x86e   :  { %v1265_v52 = vpop.xlane.xlu0 %1264 }
 0x86f   :  { %1844 = vrcp.f32 %v1265_v52 }
 0x872   :  { %v1002_v34 = vpop.xlane.xlu1 %1001  ;;  %v999_v53 = vpop.xlane.xlu0 %998 }
 0x873   :  { %1846 = vrcp.f32 %v1002_v34 }
 0x874   :  { %1848 = vrcp.f32 %v999_v53 }
 0x875   :  { %v1843_v59 = vpop.eup %1842 }
 0x876   :  { %v1274_v56 = vpop.xlane.xlu1 %1273  ;;  %v1271_v42 = vpop.xlane.xlu0 %1270  ;;  %v1280_v60 = vmul.f32 %v1843_v59, %v1827_v27 }
 0x877   :  { %1850 = vrcp.f32 %v1274_v56 }
 0x878   :  { %1852 = vrcp.f32 %v1271_v42 }
 0x879   :  { %v1845_v44 = vpop.eup %1844 }
 0x87a   :  { %v1279_v61 = vmul.f32 %v1845_v44, %v1829_v30  ;;  %v1013_v7 = vpop.permute.xlu0 %1012 }
 0x87c   :  { %v1768_v62 = vpack.c.bf16 %v1280_v60, %v1279_v61 }
 0x87d   :  { %v1847_v18 = vpop.eup %1846 }
 0x87e   :  { %v1849_v63 = vpop.eup %1848  ;;  %v1010_v0 = vmul.f32 %v1847_v18, %v1833_v32  ;;  %1770 = vmatpush3.bf16.xpose.msk.msra.mxu0 %vm2036_vm7, %v1768_v62 }
 0x87f   :  { %v1009_v1 = vmul.f32 %v1849_v63, %v1831_v31  ;;  %1771 = vmatprep.subr.bf16.mxu0 %v1856_v25  ;;  %v1285_v25 = vpop.permute.xlu1 %1284 }
 0x881   :  { %v1851_v17 = vpop.eup %1850  ;;  %v1764_v2 = vpack.c.bf16 %v1010_v0, %v1009_v1 }
 0x882   :  { %v1853_v3 = vpop.eup %1852  ;;  %v1282_v4 = vmul.f32 %v1851_v17, %v1837_v37  ;;  %v1386_v21 = vpop.permute.xlu0 %1385 }
 0x883   :  { %v1281_v5 = vmul.f32 %v1853_v3, %v1835_v35  ;;  %1766 = vmatpush3.bf16.xpose.msk.msra.mxu1 %vm2036_vm7, %v1764_v2  ;;  %v1381_v23 = vpop.permute.xlu1 %1380 }
 0x884   :  { %1776 = vmatprep.subr.bf16.mxu1 %v2120_v22 }
 0x885   :  { %v1772_v6 = vpack.c.bf16 %v1282_v4, %v1281_v5 }
 0x886   :  { %v1396_v29 = vpop.permute.xlu0 %1395 }
 0x887   :  { %1774 = vmatpush3.bf16.xpose.msk.msra.mxu0 %vm2036_vm7, %v1772_v6  ;;  %v1391_v19 = vpop.permute.xlu1 %1390 }
 0x88a   :  { %1700 = vmatmul.mubr.msk.f32.vlgmr.msra.gmra.mrb[14].mxu1 %vm111_vm0, %v1013_v7 }
 0x88b   :  { %1778 = vmatpush3.bf16.msra.mxu1 %v2120_v22  ;;  %1729 = vmatprep.mubr.msk.f32.mxu1 %vm111_vm0, %v1370_v8  ;;  %v1371_v22 = vld [vmem:[%s2235_s4 + $0x8] sm:$0xff] }
 0x88e   :  { %1719 = vmatmul.mubr.msk.f32.vlgmr.msra.gmra.mrb[18].mxu0 %vm111_vm0, %v1285_v25 }
 0x95d   :  { %v1094_v9 = vpop.f32.mrb[14].mxu1 }
 0x95e   :  { %v1701_v10 = vpop.f32.mrb[15].mxu1 }
 0x961   :  { %v1366_v11 = vpop.f32.mrb[18].mxu0 }
 0x962   :  { %v1779_v12 = vpack.c.bf16 %v1366_v11, %v1094_v9  ;;  %v1720_v40 = vpop.f32.mrb[19].mxu0 }
 0x964   :  { %1780 = vmatprep.subr.bf16.mxu1 %v1779_v12 }
 0x965   :  { %1782 = vmatpush3.bf16.msra.mxu1 %v1779_v12 }
 0x968   :  { %1730 = vmatmul.mubr.msk.f32.vlgmr.msra.gmra.mrb[16].mxu1 %vm111_vm0, %v1371_v22 }
 0x969   :  { %1732 = vmatprep.mubr.msk.f32.mxu1 %vm111_vm0, %v1372_v13 }
 0x96c   :  { %1733 = vmatmul.mubr.msk.f32.gmra.mrb[18].mxu1 %vm111_vm0, %v1373_v14 }
 0xa3b   :  { %v1731_v24 = vpop.f32.mrb[16].mxu1 }
 0xa3c   :  { %v1482_v26 = vadd.f32 %v1731_v24, %v1386_v21  ;;  %v1476_v27 = vpop.f32.mrb[17].mxu1 }
 0xa3d   :  { %v1477_v28 = vadd.f32 %v1476_v27, %v1381_v23 }
 0xa3e   :  { %1496 = vst.msk [vmem:[%s2236_s6 + $0x8] sm:$0xff] %vm111_vm0, %v1482_v26 }
 0xa3f   :  { %1495 = vst.msk [vmem:[%s2236_s6] sm:$0xff] %vm111_vm0, %v1477_v28  ;;  %v1734_v30 = vpop.f32.mrb[18].mxu1 }
 0xa40   :  { %v1492_v31 = vadd.f32 %v1734_v30, %v1396_v29  ;;  %v1486_v32 = vpop.f32.mrb[19].mxu1 }
 0xa41   :  { %v1487_v54 = vadd.f32 %v1486_v32, %v1391_v19 }
 0xa42   :  { %1498 = vst.msk [vmem:[%s2236_s6 + $0x18] sm:$0xff] %vm111_vm0, %v1492_v31 }
 0xa43   :  { %1497 = vst.msk [vmem:[%s2236_s6 + $0x10] sm:$0xff] %vm111_vm0, %v1487_v54 }

</bundles_post_ra>
